<compile_context>
chip_gen: v7x
topology: tpu7x:2x2x1
jax: 0.10.0
libtpu: 0.0.40
codegen_flags: <defaults>
</compile_context>

<pallas_src>
import functools
import math

import numpy as np
import jax
import jax.numpy as jnp
from jax.experimental import pallas as pl
from jax.experimental.pallas import tpu as pltpu


# --------------------------------------------------------------------------- #
# Host-side helpers (tiny, compile-time only)
# --------------------------------------------------------------------------- #
def _normalize_ranges(ranges, n_features):
    """Accept the torch module's dict ({0: (lo,hi), ...}) or a sequence."""
    if hasattr(ranges, "values"):
        ranges = [ranges[i] for i in range(n_features)]
    return tuple((float(lo), float(hi)) for lo, hi in ranges)


def _make_edges(num_bins, ranges):
    """torch.linspace(f_min, f_max, nb-1) per feature, as python float tuples."""
    edges = []
    for fi, nb in enumerate(num_bins):
        lo, hi = ranges[fi]
        if nb >= 2:
            e = np.linspace(lo, hi, nb - 1, dtype=np.float32)
        else:                                  # nb == 1: no edges, single bin
            e = np.zeros((0,), np.float32)
        edges.append(tuple(float(x) for x in e))
    return tuple(edges)


def _auto_tile_n(n, d, feat_itemsize, num_cores):
    # Per-row working set: double-buffered feature row + f32 intermediates
    # (f / gathered / diff) + a few lane-padded (tn,1) columns + lane-dense
    # target/one-hot rows.  Budget ~12 MiB -> comfortably inside the 32 MiB
    # scoped-VMEM limit on v5e/v6e/v7x.
    bytes_per_row = 2 * d * feat_itemsize + 16 * d + 2304
    tile = (12 * 1024 * 1024) // max(bytes_per_row, 1)
    tile = min(tile, -(-n // num_cores))              # no bigger than a core's share
    tile = max(128, min(4096, 128 * (-(-tile // 128))))  # lane-aligned (target block is (F, tile))
    return int(tile)


# --------------------------------------------------------------------------- #
# Kernel
# --------------------------------------------------------------------------- #
def _bin_loss_kernel(feat_ref, tgt_ref, cent_ref, out_ref, *,
                     edges, num_bins, ranges, tiles_per_core, n_valid):
    """One grid step processes a (tile_n, D) slab of samples.

    feat_ref: (tile_n, D)      features (f32 or bf16, cast in-kernel)
    tgt_ref : (F, tile_n) f32  raw target values, lane-dense
    cent_ref: (Kp, D)     f32  centers (rows padded with zeros up to Kp)
    out_ref : (1, 1, 1)   f32  per-core partial SUM of clamped distances
    """
    c = pl.program_id(0)          # core (parallel axis, v7x dual-TC)
    i = pl.program_id(1)          # per-core reduction step
    tn = feat_ref.shape[0]
    kp = cent_ref.shape[0]

    @pl.when(i == 0)
    def _init():
        out_ref[...] = jnp.zeros_like(out_ref)

    # ---- get_class: fused per-feature binning against baked edge constants ----
    # searchsorted(edges, v, right=False) == count(edges < v)
    t = tgt_ref[...]                                        # (F, tn) lane-dense
    lab = jnp.zeros((1, tn), jnp.float32)
    for fi, nb in enumerate(num_bins):
        v = t[fi:fi + 1, :]                                 # (1, tn)
        cnt = jnp.zeros((1, tn), jnp.float32)
        for e in edges[fi]:                                 # static float immediates
            cnt = cnt + jnp.where(v > e, 1.0, 0.0)
        lo, hi = ranges[fi]
        cnt = jnp.where(v < lo, 0.0, cnt)                   # torch.where overrides
        cnt = jnp.where(v > hi, float(nb - 1), cnt)
        lab = lab * float(nb) + cnt                         # exact small ints in f32

    # ---- exact per-sample center gather via a one-hot matmul on the MXU ----
    classes = jax.lax.broadcasted_iota(jnp.int32, (kp, tn), 0).astype(jnp.float32)
    onehot_t = jnp.where(lab == classes, 1.0, 0.0)          # (Kp, tn), one 1 per column
    f = feat_ref[...].astype(jnp.float32)                   # (tn, D)
    gathered = jax.lax.dot_general(                         # == centers[labels]  (tn, D)
        onehot_t, cent_ref[...],
        dimension_numbers=(((0,), (0,)), ((), ())),         # contract the class axis
        preferred_element_type=jnp.float32)

    # ---- centre_loss: exact squared distance, clamp, masked accumulate ----
    diff = f - gathered
    dist = jnp.sum(diff * diff, axis=1, keepdims=True)      # (tn, 1) == cdist^2 row
    dist = jnp.clip(dist, 1e-12, 1e12)                      # torch .clamp(1e-12, 1e12)

    row0 = (c * tiles_per_core + i) * tn
    rows = jax.lax.broadcasted_iota(jnp.int32, (tn, 1), 0) + row0
    dist = jnp.where(rows < n_valid, dist, 0.0)             # drop N-padding rows

    out_ref[...] += jnp.sum(dist, axis=0, keepdims=True).reshape(1, 1, 1)


# --------------------------------------------------------------------------- #
# Wrapper
# --------------------------------------------------------------------------- #
def bin_loss(features, target, centers, num_bins, ranges, *,
             tile_n=None, num_cores=2):
    """Pallas implementation of BinLoss.forward(features, target).

    num_cores=2 shards the sample loop across both TensorCores on v7x
    (dimension_semantics "parallel"); on 1-TC chips (v5e/v6e) the outer axis
    simply runs serially with no semantic change.
    """
    num_bins = tuple(int(b) for b in num_bins)
    n, d = features.shape
    n_feat = target.shape[1]
    k = centers.shape[0]
    assert k == math.prod(num_bins)
    assert n_feat == len(num_bins)
    ranges = _normalize_ranges(ranges, n_feat)
    edges = _make_edges(num_bins, ranges)

    # bf16 features are streamed as-is (cast in-kernel); everything else f32.
    if features.dtype not in (jnp.float32, jnp.bfloat16):
        features = features.astype(jnp.float32)
    target_t = target.astype(jnp.float32).T                 # (F, N) lane-dense stream
    centers = centers.astype(jnp.float32)
    k_pad = max(8, 8 * (-(-k // 8)))                        # sublane-align class axis
    if k_pad != k:
        centers = jnp.pad(centers, ((0, k_pad - k), (0, 0)))  # zero rows never selected

    num_cores = max(1, int(num_cores))
    if tile_n is None:
        tile_n = _auto_tile_n(n, d, features.dtype.itemsize, num_cores)
    else:
        tile_n = max(128, min(int(tile_n), 65536))
        tile_n = 128 * (-(-tile_n // 128))                  # lane-align (target block)

    tiles_per_core = -(-n // (tile_n * num_cores))
    n_pad = num_cores * tiles_per_core * tile_n
    if n_pad != n:
        features = jnp.pad(features, ((0, n_pad - n), (0, 0)))
        target_t = jnp.pad(target_t, ((0, 0), (0, n_pad - n)))

    kernel = functools.partial(
        _bin_loss_kernel,
        edges=edges,
        num_bins=num_bins,
        ranges=ranges,
        tiles_per_core=tiles_per_core,
        n_valid=n,
    )

    partial_sums = pl.pallas_call(
        kernel,
        out_shape=jax.ShapeDtypeStruct((num_cores, 1, 1), jnp.float32),
        grid=(num_cores, tiles_per_core),
        in_specs=[
            # features: streamed (tile_n, D) slabs
            pl.BlockSpec((tile_n, d), lambda c, i: (c * tiles_per_core + i, 0)),
            # target: lane-dense (F, tile_n) slabs
            pl.BlockSpec((n_feat, tile_n), lambda c, i: (0, c * tiles_per_core + i)),
            # centers: VMEM-resident across the whole grid
            pl.BlockSpec((k_pad, d), lambda c, i: (0, 0)),
        ],
        out_specs=pl.BlockSpec((1, 1, 1), lambda c, i: (c, 0, 0)),
        compiler_params=pltpu.CompilerParams(
            dimension_semantics=("parallel", "arbitrary"),
            vmem_limit_bytes=32 * 1024 * 1024,
        ),
    )(features, target_t, centers)

    # Combine raw per-core sums; the denominator is exactly N (one match / row).
    return jnp.sum(partial_sums) / float(n)


# --------------------------------------------------------------------------- #
# Pure-JAX reference (exact, no MXU) for verification
# --------------------------------------------------------------------------- #
def _reference_bin_loss(features, target, centers, num_bins, ranges):
    num_bins = tuple(int(b) for b in num_bins)
    ranges = _normalize_ranges(ranges, len(num_bins))
    edges = _make_edges(num_bins, ranges)
    features = features.astype(jnp.float32)
    centers = centers.astype(jnp.float32)
    combined = jnp.zeros((target.shape[0],), jnp.int32)
    for fi, nb in enumerate(num_bins):
        lo, hi = ranges[fi]
        e = jnp.asarray(np.asarray(edges[fi], np.float32))
        v = target[:, fi].astype(jnp.float32)
        fb = jnp.searchsorted(e, v, side="left").astype(jnp.int32)
        fb = jnp.where(v < lo, 0, fb)
        fb = jnp.where(v > hi, nb - 1, fb)
        combined = combined * nb + fb
    dist = jnp.sum((features[:, None, :] - centers[None, :, :]) ** 2, axis=-1)
    dist = jnp.clip(dist, 1e-12, 1e12)
    mask = combined[:, None] == jnp.arange(centers.shape[0])[None, :]
    return jnp.sum(jnp.where(mask, dist, 0.0)) / jnp.sum(mask)


if __name__ == "__main__":
    key = jax.random.PRNGKey(0)
    k1, k2, k3, k4 = jax.random.split(key, 4)

    num_bins = (4, 3)                              # K = prod(num_bins) = 12 centers
    ranges = {0: (0.0, 1.0), 1: (-2.0, 2.0)}       # dict, like the torch module
    n, d = 32, 128                                 # samples, feature dim
    k_classes = math.prod(num_bins)

    centers = jax.random.uniform(k1, (k_classes, d), dtype=jnp.float32)  # torch.rand init
    features = jax.random.normal(k2, (n, d), dtype=jnp.float32)
    t0 = jax.random.uniform(k3, (n, 1), minval=-0.2, maxval=1.2)
    t1 = jax.random.uniform(k4, (n, 1), minval=-2.5, maxval=2.5)
    target = jnp.concatenate([t0, t1], axis=1)     # (n, 2) raw target values

    loss = jax.block_until_ready(
        bin_loss(features, target, centers, num_bins, ranges))
    ref = jax.block_until_ready(
        _reference_bin_loss(features, target, centers, num_bins, ranges))

    assert bool(jnp.isfinite(loss)), loss
    # One-hot gather removes the Gram-form cancellation, so the tolerance is
    # much tighter than the previous rtol=1e-2 (bounded only by MXU f32 passes).
    assert jnp.allclose(loss, ref, rtol=1e-3, atol=1e-5), (loss, ref)

    print("KERNEL_OK")
</pallas_src>

<mosaic_0001>
module attributes {stable_mosaic.version = 11 : i64} {
  func.func @_bin_loss_kernel(%arg0: i32, %arg1: i32, %arg2: memref<128x128xf32, #tpu.memory_space<vmem>>, %arg3: memref<2x128xf32, #tpu.memory_space<vmem>>, %arg4: memref<16x128xf32, #tpu.memory_space<vmem>>, %arg5: memref<1x1x1xf32, #tpu.memory_space<vmem>>) attributes {dimension_semantics = [#tpu.dimension_semantics<parallel>, #tpu.dimension_semantics<arbitrary>], iteration_bounds = array<i64: 2, 1>, scalar_prefetch = 0 : i64, scratch_operands = 0 : i64, tpu.core_type = #tpu.core_type<tc>, window_params = [{transform_indices = @transform_0, window_bounds = array<i64: 128, 128>}, {transform_indices = @transform_1, window_bounds = array<i64: 2, 128>}, {pipeline_mode = #tpu.pipeline_mode<synchronous>, transform_indices = @transform_2, window_bounds = array<i64: 16, 128>}, {transform_indices = @transform_3, window_bounds = array<i64: 1, 1, 1>}]} {
    %c0_i32 = arith.constant 0 : i32
    %0 = arith.cmpi eq, %arg1, %c0_i32 : i32
    %1 = arith.extui %0 : i1 to i32
    %c0_i32_0 = arith.constant 0 : i32
    %2 = arith.cmpi ne, %1, %c0_i32_0 : i32
    scf.if %2 {
      %cst_47 = arith.constant 0.000000e+00 : f32
      %95 = vector.broadcast %cst_47 : f32 to vector<1x1x1xf32>
      %c0_48 = arith.constant 0 : index
      %c0_49 = arith.constant 0 : index
      %c0_50 = arith.constant 0 : index
      %96 = vector.load %arg5[%c0_48, %c0_49, %c0_50] : memref<1x1x1xf32, #tpu.memory_space<vmem>>, vector<1x1x1xf32>
      tpu.vector_store %arg5[%c0_48, %c0_49, %c0_50], %95 {strides = array<i32>} : memref<1x1x1xf32, #tpu.memory_space<vmem>>, vector<1x1x1xf32>,
    } else {
    }
    %c0 = arith.constant 0 : index
    %c0_1 = arith.constant 0 : index
    %3 = vector.load %arg3[%c0, %c0_1] : memref<2x128xf32, #tpu.memory_space<vmem>>, vector<2x128xf32>
    %cst = arith.constant 0.000000e+00 : f32
    %4 = vector.broadcast %cst : f32 to vector<1x128xf32>
    %5 = vector.extract_strided_slice %3 {offsets = [0, 0], sizes = [1, 128], strides = [1, 1]} : vector<2x128xf32> to vector<1x128xf32>
    %cst_2 = arith.constant 0.000000e+00 : f32
    %6 = vector.broadcast %cst_2 : f32 to vector<1x128xf32>
    %cst_3 = arith.constant 0.000000e+00 : f32
    %7 = vector.broadcast %cst_3 : f32 to vector<1x128xf32>
    %8 = arith.cmpf ogt, %5, %7 : vector<1x128xf32>
    %cst_4 = arith.constant 1.000000e+00 : f32
    %cst_5 = arith.constant 0.000000e+00 : f32
    %9 = vector.broadcast %cst_4 : f32 to vector<1x128xf32>
    %10 = vector.broadcast %cst_5 : f32 to vector<1x128xf32>
    %11 = arith.select %8, %9, %10 : vector<1x128xi1>, vector<1x128xf32>
    %12 = arith.addf %6, %11 : vector<1x128xf32>
    %cst_6 = arith.constant 5.000000e-01 : f32
    %13 = vector.broadcast %cst_6 : f32 to vector<1x128xf32>
    %14 = arith.cmpf ogt, %5, %13 : vector<1x128xf32>
    %cst_7 = arith.constant 1.000000e+00 : f32
    %cst_8 = arith.constant 0.000000e+00 : f32
    %15 = vector.broadcast %cst_7 : f32 to vector<1x128xf32>
    %16 = vector.broadcast %cst_8 : f32 to vector<1x128xf32>
    %17 = arith.select %14, %15, %16 : vector<1x128xi1>, vector<1x128xf32>
    %18 = arith.addf %12, %17 : vector<1x128xf32>
    %cst_9 = arith.constant 1.000000e+00 : f32
    %19 = vector.broadcast %cst_9 : f32 to vector<1x128xf32>
    %20 = arith.cmpf ogt, %5, %19 : vector<1x128xf32>
    %cst_10 = arith.constant 1.000000e+00 : f32
    %cst_11 = arith.constant 0.000000e+00 : f32
    %21 = vector.broadcast %cst_10 : f32 to vector<1x128xf32>
    %22 = vector.broadcast %cst_11 : f32 to vector<1x128xf32>
    %23 = arith.select %20, %21, %22 : vector<1x128xi1>, vector<1x128xf32>
    %24 = arith.addf %18, %23 : vector<1x128xf32>
    %cst_12 = arith.constant 0.000000e+00 : f32
    %25 = vector.broadcast %cst_12 : f32 to vector<1x128xf32>
    %26 = arith.cmpf olt, %5, %25 : vector<1x128xf32>
    %cst_13 = arith.constant 0.000000e+00 : f32
    %27 = vector.broadcast %cst_13 : f32 to vector<1x128xf32>
    %28 = arith.select %26, %27, %24 : vector<1x128xi1>, vector<1x128xf32>
    %cst_14 = arith.constant 1.000000e+00 : f32
    %29 = vector.broadcast %cst_14 : f32 to vector<1x128xf32>
    %30 = arith.cmpf ogt, %5, %29 : vector<1x128xf32>
    %cst_15 = arith.constant 3.000000e+00 : f32
    %31 = vector.broadcast %cst_15 : f32 to vector<1x128xf32>
    %32 = arith.select %30, %31, %28 : vector<1x128xi1>, vector<1x128xf32>
    %cst_16 = arith.constant 4.000000e+00 : f32
    %33 = vector.broadcast %cst_16 : f32 to vector<1x128xf32>
    %34 = arith.mulf %4, %33 : vector<1x128xf32>
    %35 = arith.addf %34, %32 : vector<1x128xf32>
    %36 = vector.extract_strided_slice %3 {offsets = [1, 0], sizes = [1, 128], strides = [1, 1]} : vector<2x128xf32> to vector<1x128xf32>
    %cst_17 = arith.constant 0.000000e+00 : f32
    %37 = vector.broadcast %cst_17 : f32 to vector<1x128xf32>
    %cst_18 = arith.constant -2.000000e+00 : f32
    %38 = vector.broadcast %cst_18 : f32 to vector<1x128xf32>
    %39 = arith.cmpf ogt, %36, %38 : vector<1x128xf32>
    %cst_19 = arith.constant 1.000000e+00 : f32
    %cst_20 = arith.constant 0.000000e+00 : f32
    %40 = vector.broadcast %cst_19 : f32 to vector<1x128xf32>
    %41 = vector.broadcast %cst_20 : f32 to vector<1x128xf32>
    %42 = arith.select %39, %40, %41 : vector<1x128xi1>, vector<1x128xf32>
    %43 = arith.addf %37, %42 : vector<1x128xf32>
    %cst_21 = arith.constant 2.000000e+00 : f32
    %44 = vector.broadcast %cst_21 : f32 to vector<1x128xf32>
    %45 = arith.cmpf ogt, %36, %44 : vector<1x128xf32>
    %cst_22 = arith.constant 1.000000e+00 : f32
    %cst_23 = arith.constant 0.000000e+00 : f32
    %46 = vector.broadcast %cst_22 : f32 to vector<1x128xf32>
    %47 = vector.broadcast %cst_23 : f32 to vector<1x128xf32>
    %48 = arith.select %45, %46, %47 : vector<1x128xi1>, vector<1x128xf32>
    %49 = arith.addf %43, %48 : vector<1x128xf32>
    %cst_24 = arith.constant -2.000000e+00 : f32
    %50 = vector.broadcast %cst_24 : f32 to vector<1x128xf32>
    %51 = arith.cmpf olt, %36, %50 : vector<1x128xf32>
    %cst_25 = arith.constant 0.000000e+00 : f32
    %52 = vector.broadcast %cst_25 : f32 to vector<1x128xf32>
    %53 = arith.select %51, %52, %49 : vector<1x128xi1>, vector<1x128xf32>
    %cst_26 = arith.constant 2.000000e+00 : f32
    %54 = vector.broadcast %cst_26 : f32 to vector<1x128xf32>
    %55 = arith.cmpf ogt, %36, %54 : vector<1x128xf32>
    %cst_27 = arith.constant 2.000000e+00 : f32
    %56 = vector.broadcast %cst_27 : f32 to vector<1x128xf32>
    %57 = arith.select %55, %56, %53 : vector<1x128xi1>, vector<1x128xf32>
    %cst_28 = arith.constant 3.000000e+00 : f32
    %58 = vector.broadcast %cst_28 : f32 to vector<1x128xf32>
    %59 = arith.mulf %35, %58 : vector<1x128xf32>
    %60 = arith.addf %59, %57 : vector<1x128xf32>
    %61 = tpu.iota {dimensions = array<i32: 0>} : vector<16x128xi32>
    %62 = arith.sitofp %61 : vector<16x128xi32> to vector<16x128xf32>
    %63 = vector.broadcast %60 : vector<1x128xf32> to vector<16x128xf32>
    %64 = arith.cmpf oeq, %63, %62 : vector<16x128xf32>
    %cst_29 = arith.constant 1.000000e+00 : f32
    %cst_30 = arith.constant 0.000000e+00 : f32
    %65 = vector.broadcast %cst_29 : f32 to vector<16x128xf32>
    %66 = vector.broadcast %cst_30 : f32 to vector<16x128xf32>
    %67 = arith.select %64, %65, %66 : vector<16x128xi1>, vector<16x128xf32>
    %c0_31 = arith.constant 0 : index
    %c0_32 = arith.constant 0 : index
    %68 = vector.load %arg2[%c0_31, %c0_32] : memref<128x128xf32, #tpu.memory_space<vmem>>, vector<128x128xf32>
    %c0_33 = arith.constant 0 : index
    %c0_34 = arith.constant 0 : index
    %69 = vector.load %arg4[%c0_33, %c0_34] : memref<16x128xf32, #tpu.memory_space<vmem>>, vector<16x128xf32>
    %cst_35 = arith.constant dense<0.000000e+00> : vector<128x128xf32>
    %70 = tpu.matmul %67, %69, %cst_35 {dimension_numbers = #tpu.dot_dimension_numbers<[0], [0], [1], [1], [0, 1, 1, 1], [], []>} : vector<16x128xf32>, vector<16x128xf32>, vector<128x128xf32> -> vector<128x128xf32>
    %71 = arith.subf %68, %70 : vector<128x128xf32>
    %72 = arith.mulf %71, %71 : vector<128x128xf32>
    %cst_36 = arith.constant dense<0.000000e+00> : vector<128xf32>
    %73 = vector.multi_reduction <add>, %72, %cst_36 [1] : vector<128x128xf32> to vector<128xf32>
    %74 = vector.shape_cast %73 : vector<128xf32> to vector<128x1xf32>
    %cst_37 = arith.constant 9.99999996E-13 : f32
    %cst_38 = arith.constant 9.99999995E+11 : f32
    %75 = vector.broadcast %cst_37 : f32 to vector<128x1xf32>
    %76 = arith.maximumf %75, %74 : vector<128x1xf32>
    %77 = vector.broadcast %cst_38 : f32 to vector<128x1xf32>
    %78 = arith.minimumf %77, %76 : vector<128x1xf32>
    %c1_i32 = arith.constant 1 : i32
    %79 = arith.muli %arg0, %c1_i32 : i32
    %80 = arith.addi %79, %arg1 : i32
    %c128_i32 = arith.constant 128 : i32
    %81 = arith.muli %80, %c128_i32 : i32
    %82 = tpu.iota {dimensions = array<i32: 0>} : vector<128x1xi32>
    %83 = vector.broadcast %81 : i32 to vector<128x1xi32>
    %84 = arith.addi %82, %83 : vector<128x1xi32>
    %c32_i32 = arith.constant 32 : i32
    %85 = vector.broadcast %c32_i32 : i32 to vector<128x1xi32>
    %86 = arith.cmpi slt, %84, %85 : vector<128x1xi32>
    %cst_39 = arith.constant 0.000000e+00 : f32
    %87 = vector.broadcast %cst_39 : f32 to vector<128x1xf32>
    %88 = arith.select %86, %78, %87 : vector<128x1xi1>, vector<128x1xf32>
    %c0_40 = arith.constant 0 : index
    %c0_41 = arith.constant 0 : index
    %c0_42 = arith.constant 0 : index
    %89 = vector.load %arg5[%c0_40, %c0_41, %c0_42] : memref<1x1x1xf32, #tpu.memory_space<vmem>>, vector<1x1x1xf32>
    %cst_43 = arith.constant dense<0.000000e+00> : vector<1xf32>
    %90 = vector.multi_reduction <add>, %88, %cst_43 [0] : vector<128x1xf32> to vector<1xf32>
    %91 = vector.shape_cast %90 : vector<1xf32> to vector<1x1xf32>
    %92 = vector.shape_cast %91 : vector<1x1xf32> to vector<1x1x1xf32>
    %93 = arith.addf %89, %92 : vector<1x1x1xf32>
    %c0_44 = arith.constant 0 : index
    %c0_45 = arith.constant 0 : index
    %c0_46 = arith.constant 0 : index
    %94 = vector.load %arg5[%c0_44, %c0_45, %c0_46] : memref<1x1x1xf32, #tpu.memory_space<vmem>>, vector<1x1x1xf32>
    tpu.vector_store %arg5[%c0_44, %c0_45, %c0_46], %93 {strides = array<i32>} : memref<1x1x1xf32, #tpu.memory_space<vmem>>, vector<1x1x1xf32>,
    return
  }
  func.func @transform_0(%arg0: i32, %arg1: i32) -> (i32, i32) {
    %c1_i32 = arith.constant 1 : i32
    %0 = arith.muli %arg0, %c1_i32 : i32
    %1 = arith.addi %0, %arg1 : i32
    %c0_i32 = arith.constant 0 : i32
    %c0_i32_0 = arith.constant 0 : i32
    return %1, %c0_i32 : i32, i32
  }
  func.func @transform_1(%arg0: i32, %arg1: i32) -> (i32, i32) {
    %c1_i32 = arith.constant 1 : i32
    %0 = arith.muli %arg0, %c1_i32 : i32
    %1 = arith.addi %0, %arg1 : i32
    %c0_i32 = arith.constant 0 : i32
    %c0_i32_0 = arith.constant 0 : i32
    return %c0_i32, %1 : i32, i32
  }
  func.func @transform_2(%arg0: i32, %arg1: i32) -> (i32, i32) {
    %c0_i32 = arith.constant 0 : i32
    %c0_i32_0 = arith.constant 0 : i32
    %c0_i32_1 = arith.constant 0 : i32
    return %c0_i32, %c0_i32_0 : i32, i32
  }
  func.func @transform_3(%arg0: i32, %arg1: i32) -> (i32, i32, i32) {
    %c0_i32 = arith.constant 0 : i32
    %c0_i32_0 = arith.constant 0 : i32
    %c0_i32_1 = arith.constant 0 : i32
    return %arg0, %c0_i32, %c0_i32_0 : i32, i32, i32
  }
}

</mosaic_0001>

<bundles_post_ra>
// kernel: tpu_custom_call.1
= control target key start
LH: loop header
LB: loop body
LE: loop exit
PB: predicated region body
PF: predicated region fallthrough
CT: control target
= control target key end

     0   :  { %8 = vsyncpa [#allocation3], 0  ;;  %s1469_s0 = inlined_call_operand.hbm [shape: f32[256,128], index: 0, kind: input, shape index: {}]   ;;  %s1470_s1 = inlined_call_operand.hbm [shape: f32[2,256], index: 1, kind: input, shape index: {}]   ;;  %s1471_s2 = inlined_call_operand.hbm [shape: f32[16,128], index: 2, kind: input, shape index: {}]   ;;  %s1472_s3 = inlined_call_operand.vmem [shape: f32[2,1,1], index: 3, kind: output, shape index: {}]  }
   0x1   :  { %10 = vsyncpa [#allocation3 + $0x1], 0 }
   0x2   :  { %11 = vsyncpa [#allocation5], 0 }
   0x3   :  { %13 = vsyncpa [#allocation5 + $0x1], 0  ;;  %s1171_s12 = smov 0   ;;  %s1173_s13 = smov 0  }
   0x4   :  { %s1175_s14 = smov 0   ;;  %s1177_s15 = smov 0  }
   0x5   :  { %s1179_s16 = smov 0   ;;  %s1181_s17 = smov 0  }
   0x6 LB: > { %s1477_s18 = sadd.s32 4294967295, %s1143_s17   ;;  %p53_p0 = scmp.ne.s32.totalorder %s1127_s13, %s1123_s12  ;;  %s1143_s17 = sphi %s1181_s17, %s19_s17   ;;  %s1139_s16 = sphi %s1179_s16, %s1491_s16   ;;  %s1135_s15 = sphi %s1177_s15, %s1490_s15   ;;  %s1131_s14 = sphi %s1175_s14, %s1489_s14   ;;  %s1127_s13 = sphi %s1173_s13, %s1488_s13   ;;  %s1123_s12 = sphi %s1171_s12, %s1487_s12  }
   0x7   : > { %p1203_p1 = scmp.eq.s32.totalorder %s1477_s18, 0  ;;  %p839_p2 = scmp.ge.s32.totalorder %s1143_s17, 1 }
   0x8   : > { %p139_p3 = scmp.lt.s32.totalorder %s1143_s17, 3  ;;  %s1145_s22 = smov [#allocation6]  }
   0x9   : > { %s1478_s19 = scalar_select %p1203_p1, 1, 0 }
   0xa   : > { %p1211_p4 = por %p1203_p1, %p53_p0  ;;  %p1215_p5 = pnand %p839_p2, %p139_p3 }
   0xb   : > { %s151_s23 = sshll.u32 %s1145_s22, 4  ;;  %s31_s25 = sadd.s32 1, %s1139_s16  ;;  %s152_s23 = int_to_ptr.vmem [resolvable:$true] %s151_s23 }
   0xc   : > { %s1479_s20 = scalar_select %p1211_p4, 1, 0 }
   0xd   : > { %s1480_s21 = scalar_select %p1215_p5, 1, 0 }
   0xe   : > { %p931_p6 = pneg %p1215_p5  ;;  %s997_s28 = scalar_lea.hbm %s1471_s2, 256 }
   0xf   : > { %p998_p8 = scmp.ne.s32.totalorder %s1471_s2, %s997_s28  ;;  %p1004_p12 = scmp.lt.u32.totalorder %s997_s28, %s1471_s2 }
  0x10   : > { %p1223_p7 = pnand %p931_p6, %p1203_p1 }
  0x12   : > { %p999_p9 = pneg %p1223_p7 }
  0x14   : > { %p1000_p10 = pnand %p999_p9, %p998_p8 }
  0x16   : > { %p1001_p11 = pneg %p1000_p10 }
  0x18   : > { %p1006_p13 = pnand %p1004_p12, %p1001_p11 }
  0x1a   : > { %1009 = shalt.err (!%p1006_p13)
}
  0x1b   : > { %s1010_s6 = scalar_lea.vmem %s152_s23, 256  ;;  %p1018_p6 = scmp.lt.s32.totalorder %s152_s23, %s152_s23 }
  0x1c   : > { %p1011_p0 = scmp.ne.s32.totalorder %s152_s23, %s1010_s6  ;;  %p1019_p1 = scmp.lt.s32.totalorder %s1010_s6, %s1010_s6 }
  0x1e   : > { %p1013_p2 = pnand %p1011_p0, %p999_p9  ;;  %p1020_p4 = por %p1019_p1, %p1018_p6 }
  0x20   : > { %p1014_p3 = pneg %p1013_p2 }
  0x22   : > { %p1021_p5 = pnand %p1020_p4, %p1014_p3 }
  0x24   : > { %1024 = shalt.err (!%p1021_p5)
}
  0x25   : > { %s1146_s7 = smov 128   ;;  %s1147_s8 = smov 8  }
  0x26   : > { %934 = dma.hbm_to_vmem [thread:$0]  (!%p1223_p7), %s1471_s2, 256, %s152_s23, [#allocation5], %s1146_s7, %s1146_s7, %s1147_s8  }
  0x27   : > { %p33_p1 = scmp.ge.s32.totalorder %s31_s25, 2  ;;  %s40_s11 = sadd.s32 1, %s1131_s14 }
  0x28   : > { %p47_p4 = scmp.ne.s32.totalorder %s1131_s14, %s1127_s13  ;;  %p48_p5 = scmp.eq.s32.totalorder %s1143_s17, 0 }
  0x29   : > { %s1493_s25 = smov (%p33_p1, %s31_s25), 0  ;;  %p943_p9 = scmp.lt.s32.totalorder %s1143_s17, 2 }
  0x2a   : > { %p49_p8 = por %p48_p5, %p47_p4  ;;  %s37_s12 = ssub.s32 %s1139_s16, %s1493_s25 }
  0x2b   : > { %s1257_s22 = sand.u32 1, %s1131_s14   ;;  %p38_p10 = scmp.eq.s32.totalorder %s37_s12, 0 }
  0x2c   : > { %s842_s24 = sshll.u32 %s1257_s22, 7  ;;  %s870_s26 = sshll.u32 %s1139_s16, 11 }
  0x2d   : > { %s1262_s27 = scalar_select %p38_p10, %s1131_s14, %s40_s11  }
  0x2e   : > { %s1267_s29 = scalar_lea.hbm %s1469_s0, %s870_s26  ;;  %s169_s30 = scalar_lea.vmem [#allocation2], %s842_s24 }
  0x2f   : > { %s177_s4 = sshll.u32 %s169_s30, 4  ;;  %p1269_p7 = pnand %p943_p9, %p49_p8  ;;  %s1273_s4 = int_to_ptr.vmem [resolvable:$true] %s177_s4 }
  0x30   : > { %s187_s6 = sand.u32 1, %s1143_s17   ;;  %s166_s9 = scalar_lea.sflag [#allocation3], %s1257_s22 }
  0x31   : > { %s1025_s10 = scalar_lea.hbm %s1267_s29, 2048  ;;  %p1027_p12 = pneg %p1269_p7 }
  0x32   : > { %p1026_p11 = scmp.ne.s32.totalorder %s1267_s29, %s1025_s10  ;;  %s1030_s24 = scalar_lea.hbm %s1469_s0, 4096 }
  0x33   : > { %p1031_p2 = scmp.lt.u32.totalorder %s1267_s29, %s1469_s0  ;;  %p1032_p3 = scmp.lt.u32.totalorder %s1030_s24, %s1025_s10 }
  0x34   : > { %p1028_p13 = pnand %p1027_p12, %p1026_p11  ;;  %p1034_p1 = scmp.lt.u32.totalorder %s1025_s10, %s1267_s29 }
  0x35   : > { %p1033_p6 = por %p1032_p3, %p1031_p2 }
  0x36   : > { %p1029_p0 = pneg %p1028_p13 }
  0x37   : > { %p1035_p4 = por %p1034_p1, %p1033_p6 }
  0x39   : > { %p1036_p5 = pnand %p1035_p4, %p1029_p0 }
  0x3b   : > { %1039 = shalt.err (!%p1036_p5)
}
  0x3c   : > { %s1040_s28 = scalar_lea.vmem %s1273_s4, 2048  ;;  %s1148_s30 = smov [#allocation2]  }
  0x3d   : > { %p1041_p8 = scmp.ne.s32.totalorder %s1273_s4, %s1040_s28  ;;  %s1045_s11 = sshll.u32 %s1148_s30, 4  ;;  %s1046_s11 = int_to_ptr.vmem [resolvable:$false] %s1045_s11 }
  0x3e   : > { %s1047_s12 = scalar_lea.vmem %s1046_s11, 4096  ;;  %p1048_p11 = scmp.lt.s32.totalorder %s1273_s4, %s1046_s11 }
  0x3f   : > { %p1043_p9 = pnand %p1041_p8, %p1027_p12  ;;  %p1049_p13 = scmp.lt.s32.totalorder %s1047_s12, %s1040_s28 }
  0x41   : > { %p1044_p10 = pneg %p1043_p9  ;;  %p1050_p2 = por %p1049_p13, %p1048_p11 }
  0x43   : > { %p1051_p3 = pnand %p1050_p2, %p1044_p10 }
  0x45   : > { %1054 = shalt.err (!%p1051_p3)
}
  0x46   : > { %938 = dma.hbm_to_vmem [thread:$0]  (!%p1269_p7), %s1267_s29, 2048, %s1273_s4, %s166_s9, %s1146_s7, %s1146_s7, %s1147_s8  }
  0x47   : > { %s845_s10 = sshll.u32 %s1257_s22, 1  ;;  %s846_s24 = sshll.u32 %s1139_s16, 5 }
  0x48   : > { %s1312_s28 = scalar_lea.hbm %s1470_s1, %s846_s24  ;;  %s191_s30 = scalar_lea.vmem [#allocation4], %s845_s10 }
  0x49   : > { %s199_s11 = sshll.u32 %s191_s30, 4  ;;  %s188_s12 = scalar_lea.sflag [#allocation5], %s187_s6  ;;  %s200_s11 = int_to_ptr.vmem [resolvable:$true] %s199_s11 }
  0x4a   : > { %s1055_s18 = scalar_lea.hbm %s1312_s28, 32  ;;  %s1060_s22 = scalar_lea.hbm %s1470_s1, 64 }
  0x4b   : > { %p1056_p0 = scmp.ne.s32.totalorder %s1312_s28, %s1055_s18  ;;  %p1061_p4 = scmp.lt.u32.totalorder %s1312_s28, %s1470_s1 }
  0x4c   : > { %p1062_p5 = scmp.lt.u32.totalorder %s1060_s22, %s1055_s18  ;;  %p1064_p9 = scmp.lt.u32.totalorder %s1055_s18, %s1312_s28 }
  0x4d   : > { %p1058_p6 = pnand %p1056_p0, %p1027_p12 }
  0x4e   : > { %p1063_p8 = por %p1062_p5, %p1061_p4 }
  0x4f   : > { %p1059_p1 = pneg %p1058_p6 }
  0x50   : > { %p1065_p10 = por %p1064_p9, %p1063_p8 }
  0x52   : > { %p1066_p11 = pnand %p1065_p10, %p1059_p1 }
  0x54   : > { %1069 = shalt.err (!%p1066_p11)
}
  0x55   : > { %s1070_s6 = scalar_lea.vmem %s200_s11, 32  ;;  %s1149_s9 = smov [#allocation4]  }
  0x56   : > { %p1071_p13 = scmp.ne.s32.totalorder %s200_s11, %s1070_s6  ;;  %s1075_s10 = sshll.u32 %s1149_s9, 4  ;;  %s1076_s10 = int_to_ptr.vmem [resolvable:$false] %s1075_s10 }
  0x57   : > { %s1077_s24 = scalar_lea.vmem %s1076_s10, 64  ;;  %p1078_p0 = scmp.lt.s32.totalorder %s200_s11, %s1076_s10 }
  0x58   : > { %p1073_p2 = pnand %p1071_p13, %p1027_p12  ;;  %p1079_p6 = scmp.lt.s32.totalorder %s1077_s24, %s1070_s6 }
  0x5a   : > { %p1074_p3 = pneg %p1073_p2  ;;  %p1080_p4 = por %p1079_p6, %p1078_p0 }
  0x5c   : > { %p1081_p5 = pnand %p1080_p4, %p1074_p3 }
  0x5e   : > { %1084 = shalt.err (!%p1081_p5)
}
  0x5f   : > { %941 = dma.hbm_to_vmem [thread:$0]  (!%p1269_p7), %s1312_s28, 32, %s200_s11, %s188_s12  }
  0x60   : > { %p1483_p1 = scmp.ne.s32.totalorder %s1480_s21, 0 }
  0x61   : > { %s210_s18 = sand.u32 (!%p1483_p1), 1, %s1127_s13   ;;  %p1484_p12 = scmp.ne.s32.totalorder (!%p1483_p1), %s1479_s20, 0 }
  0x62   : > { %208 = sbr.rel (%p1483_p1) target bundleno = 704 (0x2c0), region = 32  ;;  %s848_s26 = sshll.u32 (!%p1483_p1), %s210_s18, 7 }
  0x63   : > { %s211_s23 = scalar_lea.sflag (!%p1483_p1), [#allocation3], %s210_s18  ;;  %s1338_s30 = scalar_lea.vmem (!%p1483_p1), [#allocation2], %s848_s26 }
  0x69   : > { %1110 = dma.done.wait (%p1484_p12), %s211_s23, 2048  }
  0x6a   : > { %1112 = vsyncadd (%p1484_p12), %s211_s23, 4294965248  ;;  %s1485_s7 = sadd.s32 4294967295, %s1143_s17   ;;  %s849_s28 = sshll.u32 %s210_s18, 1 }
  0x6b   : > { %s219_s5 = sand.u32 1, %s1485_s7   ;;  %s223_s21 = scalar_lea.vmem [#allocation4], %s849_s28 }
  0x6c   : > { %s220_s11 = scalar_lea.sflag [#allocation5], %s219_s5 }
  0x6d   : > { %1114 = dma.done.wait (%p1484_p12), %s220_s11, 32  }
  0x6e   : > { %1116 = vsyncadd (%p1484_p12), %s220_s11, 4294967264  ;;  %p1486_p7 = scmp.ne.s32.totalorder %s1478_s19, 0 }
  0x70   : > { %1118 = dma.done.wait (%p1486_p7), [#allocation5], 256  }
  0x71   : > { %1120 = vsyncadd (%p1486_p7), [#allocation5], 4294967040  ;;  %v265_v0 = vld [vmem:[%s223_s21] sm:$0x3]  ;;  %v293_v1 = vlaneseq  ;;  %v1150_v2 = vmov 0.0   ;;  %v322_v24 = vld [vmem:[#allocation6] sm:$0xff] }
  0x72   : > { %vm266_vm0 = vcmp.gt.f32.partialorder %v265_v0, 0.0  ;;  %vm269_vm1 = vcmp.gt.f32.partialorder %v265_v0, 0.5  ;;  %vm272_vm2 = vcmp.gt.f32.partialorder %v265_v0, 1.0  ;;  %vm279_vm3 = vcmp.gt.f32.partialorder %v265_v0, -2.0  ;;  %v323_v25 = vld [vmem:[#allocation6 + $0x8] sm:$0xff]  ;;  %v306_v47 = vld [vmem:[%s1338_s30] sm:$0xff] }
  0x73   : > { %v267_v3 = vsel %vm266_vm0, 1.0, %v1150_v2  ;;  %v270_v4 = vsel %vm269_vm1, 1.0, %v1150_v2  ;;  %v273_v5 = vsel %vm272_vm2, 1.0, %v1150_v2  ;;  %v280_v7 = vsel %vm279_vm3, 1.0, %v1150_v2  ;;  %v307_v45 = vld [vmem:[%s1338_s30 + $0x8] sm:$0xff]  ;;  %v309_v52 = vld [vmem:[%s1338_s30 + $0x18] sm:$0xff] }
  0x74   : > { %v271_v6 = vadd.f32 %v270_v4, %v267_v3  ;;  %vm282_vm4 = vcmp.gt.f32.partialorder %v265_v0, 2.0  ;;  %vm275_vm5 = vcmp.lt.f32.partialorder %v265_v0, 0.0  ;;  %vm285_vm6 = vcmp.lt.f32.partialorder %v265_v0, -2.0  ;;  %v308_v54 = vld [vmem:[%s1338_s30 + $0x10] sm:$0xff]  ;;  %v311_v61 = vld [vmem:[%s1338_s30 + $0x28] sm:$0xff]  ;;  %v310_v63 = vld [vmem:[%s1338_s30 + $0x20] sm:$0xff] }
  0x75   : > { %v283_v8 = vsel %vm282_vm4, 1.0, %v1150_v2  ;;  %v1360_v11 = vshrl.u32 %v293_v1, 7  ;;  %v917_v27 = vpack.c.bf16 %v323_v25, %v322_v24  ;;  %vm356_vm9 = vcmask 130048   ;;  %p256_p8 = scmp.lt.s32.totalorder %s1135_s15, 1  ;;  %s867_s22 = sshll.u32 %s1135_s15, 7 }
  0x76   : > { %v274_v9 = vadd.f32 %v273_v5, %v271_v6  ;;  %v284_v10 = vadd.f32 %v283_v8, %v280_v7  ;;  %v313_v5 = vld [vmem:[%s1338_s30 + $0x38] sm:$0xff]  ;;  %v312_v8 = vld [vmem:[%s1338_s30 + $0x30] sm:$0xff]  ;;  %vm263_vm10 = vcmask 0  }
  0x77   : > { %v1363_v14 = vadd.s32 8, %v1360_v11  ;;  %v300_v19 = vsub.s32 0, %v1360_v11  ;;  %v296_v21 = vcvt.s32.f32 %v1360_v11  ;;  %918 = vmatprep.subr.bf16.mxu0 %v917_v27  ;;  %921 = vmatprep.subr.bf16.mxu1 %v917_v27  ;;  %s257_s19 = scalar_select %p256_p8, %s1135_s15, 1 }
  0x78   : > { %v276_v12 = vsel %vm275_vm5, 0.0, %v274_v9  ;;  %v286_v13 = vsel %vm285_vm6, 0.0, %v284_v10  ;;  %920 = vmatpush3.bf16.msra.mxu0 %v917_v27  ;;  %922 = vmatpush3.bf16.msra.mxu1 %v917_v27 }
  0x79   : > { %v277_v15 = vsel %vm272_vm2, 3.0, %v276_v12  ;;  %v287_v16 = vsel %vm282_vm4, 2.0, %v286_v13  ;;  %v297_v22 = vcvt.s32.f32 %v1363_v14  ;;  %s1408_s8 = scalar_lea.vmem %s1472_s3, %s257_s19 }
  0x7a   : > { %v288_v17 = vmul.f32 3.0, %v277_v15  ;;  %v290_v18 = vrot.slane %v287_v16, 1  ;;  %v315_v15 = vld [vmem:[%s1338_s30 + $0x48] sm:$0xff]  ;;  %264 = vst.msk [vmem:[%s1408_s8] sm:$0x1] %vm263_vm10, %v1150_v2 }
  0x7c   : > { %v292_v20 = vadd.f32 %v290_v18, %v288_v17  ;;  %v314_v18 = vld [vmem:[%s1338_s30 + $0x40] sm:$0xff] }
  0x7e   : > { %v301_v23 = vrot.slane %v292_v20, %v300_v19 }
  0x80   : > { %vm302_vm7 = vcmp.eq.f32.partialorder %v301_v23, %v296_v21  ;;  %vm303_vm8 = vcmp.eq.f32.partialorder %v301_v23, %v297_v22  ;;  %v317_v23 = vld [vmem:[%s1338_s30 + $0x58] sm:$0xff] }
  0x81   : > { %v304_v26 = vsel %vm302_vm7, 1.0, %v1150_v2  ;;  %v305_v28 = vsel %vm303_vm8, 1.0, %v1150_v2 }
  0x82   : > { %324 = vxpose.xlu0.b32.start [1/2] (short) %v304_v26, 128  ;;  %v316_v26 = vld [vmem:[%s1338_s30 + $0x50] sm:$0xff] }
  0x86   : > { %325 = vxpose.xlu0.b32.end [2/2] (short) %v305_v28, 128 }
 0x102   : > { %v340_v29 = vpop.trf.xlu0 }
 0x103   : > { %893 = vmatprep.mubr.msk.f32.mxu0 %vm356_vm9, %v340_v29 }
 0x106   : > { %v341_v30 = vpop.trf.xlu0 }
 0x107   : > { %894 = vmatmul.mubr.msk.f32.vlgmr.msra.gmra.mrb[0].mxu0 %vm356_vm9, %v341_v30 }
 0x10a   : > { %v342_v31 = vpop.trf.xlu0 }
 0x10b   : > { %896 = vmatprep.mubr.msk.f32.mxu0 %vm356_vm9, %v342_v31  ;;  %v319_v31 = vld [vmem:[%s1338_s30 + $0x68] sm:$0xff] }
 0x10e   : > { %v343_v32 = vpop.trf.xlu0 }
 0x10f   : > { %897 = vmatmul.mubr.msk.f32.gmra.mrb[2].mxu0 %vm356_vm9, %v343_v32 }
 0x112   : > { %v344_v33 = vpop.trf.xlu0 }
 0x113   : > { %899 = vmatprep.mubr.msk.f32.mxu0 %vm356_vm9, %v344_v33 }
 0x116   : > { %v345_v34 = vpop.trf.xlu0 }
 0x117   : > { %900 = vmatmul.mubr.msk.f32.gmra.mrb[4].mxu0 %vm356_vm9, %v345_v34  ;;  %v318_v34 = vld [vmem:[%s1338_s30 + $0x60] sm:$0xff] }
 0x11a   : > { %v346_v35 = vpop.trf.xlu0 }
 0x11b   : > { %902 = vmatprep.mubr.msk.f32.mxu0 %vm356_vm9, %v346_v35 }
 0x11e   : > { %v347_v36 = vpop.trf.xlu0 }
 0x11f   : > { %903 = vmatmul.mubr.msk.f32.gmra.mrb[6].mxu0 %vm356_vm9, %v347_v36 }
 0x122   : > { %v348_v37 = vpop.trf.xlu0 }
 0x123   : > { %905 = vmatprep.mubr.msk.f32.mxu1 %vm356_vm9, %v348_v37 }
 0x126   : > { %v349_v38 = vpop.trf.xlu0 }
 0x127   : > { %906 = vmatmul.mubr.msk.f32.vlgmr.msra.gmra.mrb[0].mxu1 %vm356_vm9, %v349_v38 }
 0x12a   : > { %v350_v39 = vpop.trf.xlu0 }
 0x12b   : > { %908 = vmatprep.mubr.msk.f32.mxu1 %vm356_vm9, %v350_v39 }
 0x12e   : > { %v351_v40 = vpop.trf.xlu0 }
 0x12f   : > { %909 = vmatmul.mubr.msk.f32.gmra.mrb[2].mxu1 %vm356_vm9, %v351_v40  ;;  %v320_v40 = vld [vmem:[%s1338_s30 + $0x70] sm:$0xff] }
 0x132   : > { %v352_v41 = vpop.trf.xlu0 }
 0x133   : > { %911 = vmatprep.mubr.msk.f32.mxu1 %vm356_vm9, %v352_v41 }
 0x136   : > { %v353_v42 = vpop.trf.xlu0 }
 0x137   : > { %912 = vmatmul.mubr.msk.f32.gmra.mrb[4].mxu1 %vm356_vm9, %v353_v42  ;;  %v321_v42 = vld [vmem:[%s1338_s30 + $0x78] sm:$0xff] }
 0x13a   : > { %v354_v43 = vpop.trf.xlu0 }
 0x13b   : > { %914 = vmatprep.mubr.msk.f32.mxu1 %vm356_vm9, %v354_v43 }
 0x13e   : > { %v355_v44 = vpop.trf.xlu0 }
 0x13f   : > { %915 = vmatmul.mubr.msk.f32.gmra.mrb[6].mxu1 %vm356_vm9, %v355_v44 }
 0x1da   : > { %v895_v46 = vpop.f32.mrb[0].mxu0 }
 0x1db   : > { %v471_v48 = vpop.f32.mrb[1].mxu0  ;;  %v551_v49 = vsub.f32 %v307_v45, %v895_v46 }
 0x1dc   : > { %v550_v50 = vsub.f32 %v306_v47, %v471_v48 }
 0x1dd   : > { %v567_v51 = vmul.f32 %v551_v49, %v551_v49 }
 0x1de   : > { %v566_v53 = vmul.f32 %v550_v50, %v550_v50 }
 0x1df   : > { %584 = vadd.xlane.f32.xlu1 %v567_v51  ;;  %v648_v51 = vadd.s32 16, %v1360_v11 }
 0x1e2   : > { %v898_v55 = vpop.f32.mrb[2].mxu0 }
 0x1e3   : > { %v553_v56 = vsub.f32 %v309_v52, %v898_v55  ;;  %582 = vadd.xlane.f32.xlu1 %v566_v53  ;;  %v481_v57 = vpop.f32.mrb[3].mxu0  ;;  %v1415_v53 = vstv %s867_s22 }
 0x1e4   : > { %v552_v58 = vsub.f32 %v308_v54, %v481_v57  ;;  %v663_v55 = vadd.s32 %v1415_v53, %v1360_v11  ;;  %v665_v2 = vadd.s32 %v1415_v53, %v648_v51 }
 0x1e5   : > { %v569_v59 = vmul.f32 %v553_v56, %v553_v56 }
 0x1e6   : > { %v568_v60 = vmul.f32 %v552_v58, %v552_v58  ;;  %vm679_vm11 = vcmp.lt.s32.totalorder %v663_v55, 32  ;;  %vm681_vm13 = vcmp.lt.s32.totalorder %v665_v2, 32 }
 0x1e7   : > { %588 = vadd.xlane.f32.xlu1 %v569_v59  ;;  %v664_v59 = vadd.s32 %v1415_v53, %v1363_v14 }
 0x1e8   : > { %586 = vadd.xlane.f32.xlu0 %v568_v60 }
 0x1e9   : > { %vm680_vm12 = vcmp.lt.s32.totalorder %v664_v59, 32 }
 0x1ea   : > { %v901_v62 = vpop.f32.mrb[4].mxu0 }
 0x1eb   : > { %v555_v0 = vsub.f32 %v311_v61, %v901_v62  ;;  %v491_v1 = vpop.f32.mrb[5].mxu0  ;;  %v649_v61 = vadd.s32 24, %v1360_v11  ;;  %v650_v62 = vadd.s32 32, %v1360_v11 }
 0x1ec   : > { %v554_v4 = vsub.f32 %v310_v63, %v491_v1 }
 0x1ed   : > { %v571_v3 = vmul.f32 %v555_v0, %v555_v0  ;;  %v667_v14 = vadd.s32 %v1415_v53, %v650_v62 }
 0x1ee   : > { %v570_v6 = vmul.f32 %v554_v4, %v554_v4 }
 0x1ef   : > { %592 = vadd.xlane.f32.xlu1 %v571_v3  ;;  %vm683_vm15 = vcmp.lt.s32.totalorder %v667_v14, 32 }
 0x1f2   : > { %v904_v7 = vpop.f32.mrb[6].mxu0 }
 0x1f3   : > { %v557_v9 = vsub.f32 %v313_v5, %v904_v7  ;;  %590 = vadd.xlane.f32.xlu1 %v570_v6  ;;  %v501_v10 = vpop.f32.mrb[7].mxu0  ;;  %v666_v6 = vadd.s32 %v1415_v53, %v649_v61 }
 0x1f4   : > { %v556_v13 = vsub.f32 %v312_v8, %v501_v10 }
 0x1f5   : > { %v573_v12 = vmul.f32 %v557_v9, %v557_v9  ;;  %vm682_vm14 = vcmp.lt.s32.totalorder %v666_v6, 32 }
 0x1f6   : > { %v572_v16 = vmul.f32 %v556_v13, %v556_v13  ;;  %v652_v13 = vadd.s32 48, %v1360_v11 }
 0x1f7   : > { %596 = vadd.xlane.f32.xlu1 %v573_v12  ;;  %v651_v12 = vadd.s32 40, %v1360_v11 }
 0x1fa   : > { %v907_v17 = vpop.f32.mrb[0].mxu1 }
 0x1fb   : > { %v559_v19 = vsub.f32 %v315_v15, %v907_v17  ;;  %594 = vadd.xlane.f32.xlu1 %v572_v16  ;;  %v511_v20 = vpop.f32.mrb[1].mxu1 }
 0x1fc   : > { %v558_v22 = vsub.f32 %v314_v18, %v511_v20 }
 0x1fd   : > { %v575_v21 = vmul.f32 %v559_v19, %v559_v19 }
 0x1fe   : > { %v574_v24 = vmul.f32 %v558_v22, %v558_v22  ;;  %v669_v22 = vadd.s32 %v1415_v53, %v652_v13 }
 0x1ff   : > { %600 = vadd.xlane.f32.xlu1 %v575_v21  ;;  %v668_v21 = vadd.s32 %v1415_v53, %v651_v12 }
 0x200   : > { %vm685_vm1 = vcmp.lt.s32.totalorder %v669_v22, 32 }
 0x201   : > { %vm684_vm0 = vcmp.lt.s32.totalorder %v668_v21, 32 }
 0x202   : > { %v910_v25 = vpop.f32.mrb[2].mxu1 }
 0x203   : > { %v561_v27 = vsub.f32 %v317_v23, %v910_v25  ;;  %598 = vadd.xlane.f32.xlu1 %v574_v24  ;;  %v521_v28 = vpop.f32.mrb[3].mxu1 }
 0x204   : > { %v560_v30 = vsub.f32 %v316_v26, %v521_v28  ;;  %v653_v26 = vadd.s32 56, %v1360_v11  ;;  %v654_v28 = vadd.s32 64, %v1360_v11 }
 0x205   : > { %v577_v29 = vmul.f32 %v561_v27, %v561_v27 }
 0x206   : > { %v576_v32 = vmul.f32 %v560_v30, %v560_v30 }
 0x207   : > { %604 = vadd.xlane.f32.xlu1 %v577_v29 }
 0x20a   : > { %v913_v33 = vpop.f32.mrb[4].mxu1 }
 0x20b   : > { %v563_v35 = vsub.f32 %v319_v31, %v913_v33  ;;  %602 = vadd.xlane.f32.xlu1 %v576_v32  ;;  %v531_v36 = vpop.f32.mrb[5].mxu1  ;;  %v670_v33 = vadd.s32 %v1415_v53, %v653_v26 }
 0x20c   : > { %v562_v38 = vsub.f32 %v318_v34, %v531_v36  ;;  %v671_v34 = vadd.s32 %v1415_v53, %v654_v28 }
 0x20d   : > { %v579_v37 = vmul.f32 %v563_v35, %v563_v35  ;;  %vm686_vm2 = vcmp.lt.s32.totalorder %v670_v33, 32 }
 0x20e   : > { %v578_v39 = vmul.f32 %v562_v38, %v562_v38  ;;  %vm687_vm3 = vcmp.lt.s32.totalorder %v671_v34, 32 }
 0x20f   : > { %608 = vadd.xlane.f32.xlu1 %v579_v37 }
 0x212   : > { %v916_v41 = vpop.f32.mrb[6].mxu1 }
 0x213   : > { %606 = vadd.xlane.f32.xlu1 %v578_v39  ;;  %v541_v43 = vpop.f32.mrb[7].mxu1  ;;  %v565_v45 = vsub.f32 %v321_v42, %v916_v41  ;;  %v656_v41 = vadd.s32 80, %v1360_v11 }
 0x214   : > { %v564_v44 = vsub.f32 %v320_v40, %v541_v43  ;;  %v655_v40 = vadd.s32 72, %v1360_v11 }
 0x215   : > { %v581_v47 = vmul.f32 %v565_v45, %v565_v45 }
 0x216   : > { %v580_v46 = vmul.f32 %v564_v44, %v564_v44 }
 0x218   : > { %610 = vadd.xlane.f32.xlu1 %v580_v46 }
 0x21c   : > { %612 = vadd.xlane.f32.xlu1 %v581_v47  ;;  %v672_v47 = vadd.s32 %v1415_v53, %v655_v40 }
 0x21e   : > { %vm688_vm4 = vcmp.lt.s32.totalorder %v672_v47, 32 }
 0x26c   : > { %v585_v48 = vpop.xlane.xlu1 %584 }
 0x26d   : > { %v615_v57 = vmax.f32 %v585_v48, 1e-12  ;;  %v673_v48 = vadd.s32 %v1415_v53, %v656_v41 }
 0x26f   : > { %v631_v0 = vmin.f32 %v615_v57, 1e+12  ;;  %vm689_vm5 = vcmp.lt.s32.totalorder %v673_v48, 32 }
 0x270   : > { %v583_v49 = vpop.xlane.xlu1 %582 }
 0x271   : > { %v614_v54 = vmax.f32 %v583_v49, 1e-12  ;;  %v696_v8 = vsel %vm680_vm12, %v631_v0, 0.0  ;;  %v659_v0 = vadd.s32 104, %v1360_v11 }
 0x273   : > { %v630_v60 = vmin.f32 %v614_v54, 1e+12 }
 0x274   : > { %v589_v50 = vpop.xlane.xlu1 %588 }
 0x275   : > { %v587_v52 = vpop.xlane.xlu0 %586  ;;  %v695_v3 = vsel %vm679_vm11, %v630_v60, 0.0  ;;  %v617_v4 = vmax.f32 %v589_v50, 1e-12 }
 0x276   : > { %v616_v58 = vmax.f32 %v587_v52, 1e-12  ;;  %v712_v10 = vadd.f32 %v696_v8, %v695_v3  ;;  %v657_v52 = vadd.s32 88, %v1360_v11  ;;  %v676_v8 = vadd.s32 %v1415_v53, %v659_v0 }
 0x277   : > { %v633_v15 = vmin.f32 %v617_v4, 1e+12 }
 0x278   : > { %v632_v1 = vmin.f32 %v616_v58, 1e+12  ;;  %v658_v58 = vadd.s32 96, %v1360_v11  ;;  %v674_v60 = vadd.s32 %v1415_v53, %v657_v52  ;;  %vm692_vm8 = vcmp.lt.s32.totalorder %v676_v8, 32 }
 0x279   : > { %v698_v23 = vsel %vm682_vm14, %v633_v15, 0.0  ;;  %v661_v15 = vadd.s32 120, %v1360_v11 }
 0x27a   : > { %v697_v9 = vsel %vm681_vm13, %v632_v1, 0.0  ;;  %v675_v3 = vadd.s32 %v1415_v53, %v658_v58  ;;  %vm690_vm6 = vcmp.lt.s32.totalorder %v674_v60, 32 }
 0x27b   : > { %v713_v17 = vadd.f32 %v712_v10, %v697_v9  ;;  %v678_v22 = vadd.s32 %v1415_v53, %v661_v15 }
 0x27c   : > { %v593_v56 = vpop.xlane.xlu1 %592  ;;  %vm691_vm7 = vcmp.lt.s32.totalorder %v675_v3, 32 }
 0x27d   : > { %v619_v19 = vmax.f32 %v593_v56, 1e-12  ;;  %v714_v25 = vadd.f32 %v713_v17, %v698_v23  ;;  %vm694_vm11 = vcmp.lt.s32.totalorder %v678_v22, 32 }
 0x27f   : > { %v635_v29 = vmin.f32 %v619_v19, 1e+12 }
 0x280   : > { %v591_v63 = vpop.xlane.xlu1 %590 }
 0x281   : > { %v618_v5 = vmax.f32 %v591_v63, 1e-12  ;;  %v700_v36 = vsel %vm684_vm0, %v635_v29, 0.0 }
 0x283   : > { %v634_v16 = vmin.f32 %v618_v5, 1e+12  ;;  %v660_v5 = vadd.s32 112, %v1360_v11 }
 0x284   : > { %v597_v7 = vpop.xlane.xlu1 %596 }
 0x285   : > { %v699_v24 = vsel %vm683_vm15, %v634_v16, 0.0  ;;  %v621_v32 = vmax.f32 %v597_v7, 1e-12  ;;  %v677_v13 = vadd.s32 %v1415_v53, %v660_v5 }
 0x286   : > { %v715_v31 = vadd.f32 %v714_v25, %v699_v24 }
 0x287   : > { %v637_v42 = vmin.f32 %v621_v32, 1e+12  ;;  %vm693_vm9 = vcmp.lt.s32.totalorder %v677_v13, 32 }
 0x288   : > { %v595_v18 = vpop.xlane.xlu1 %594  ;;  %v716_v39 = vadd.f32 %v715_v31, %v700_v36 }
 0x289   : > { %v620_v20 = vmax.f32 %v595_v18, 1e-12  ;;  %v702_v49 = vsel %vm686_vm2, %v637_v42, 0.0 }
 0x28b   : > { %v636_v30 = vmin.f32 %v620_v20, 1e+12 }
 0x28c   : > { %v601_v27 = vpop.xlane.xlu1 %600 }
 0x28d   : > { %v701_v37 = vsel %vm685_vm1, %v636_v30, 0.0  ;;  %v623_v46 = vmax.f32 %v601_v27, 1e-12 }
 0x28e   : > { %v717_v44 = vadd.f32 %v716_v39, %v701_v37  ;;  %v711_v37 = vld [vmem:[%s1408_s8] sm:$0x1] }
 0x28f   : > { %v639_v55 = vmin.f32 %v623_v46, 1e+12 }
 0x290   : > { %v599_v35 = vpop.xlane.xlu1 %598  ;;  %v718_v51 = vadd.f32 %v717_v44, %v702_v49 }
 0x291   : > { %v622_v38 = vmax.f32 %v599_v35, 1e-12  ;;  %v704_v62 = vsel %vm688_vm4, %v639_v55, 0.0 }
 0x293   : > { %v638_v43 = vmin.f32 %v622_v38, 1e+12 }
 0x294   : > { %v605_v45 = vpop.xlane.xlu1 %604 }
 0x295   : > { %v703_v50 = vsel %vm687_vm3, %v638_v43, 0.0  ;;  %v625_v59 = vmax.f32 %v605_v45, 1e-12 }
 0x296   : > { %v719_v57 = vadd.f32 %v718_v51, %v703_v50 }
 0x297   : > { %v641_v4 = vmin.f32 %v625_v59, 1e+12 }
 0x298   : > { %v603_v54 = vpop.xlane.xlu1 %602  ;;  %v720_v1 = vadd.f32 %v719_v57, %v704_v62 }
 0x299   : > { %v624_v56 = vmax.f32 %v603_v54, 1e-12  ;;  %v706_v10 = vsel %vm690_vm6, %v641_v4, 0.0 }
 0x29b   : > { %v640_v2 = vmin.f32 %v624_v56, 1e+12 }
 0x29c   : > { %v609_v61 = vpop.xlane.xlu1 %608 }
 0x29d   : > { %v705_v63 = vsel %vm689_vm5, %v640_v2, 0.0  ;;  %v627_v14 = vmax.f32 %v609_v61, 1e-12 }
 0x29e   : > { %v721_v6 = vadd.f32 %v720_v1, %v705_v63 }
 0x29f   : > { %v643_v16 = vmin.f32 %v627_v14, 1e+12 }
 0x2a0   : > { %v607_v7 = vpop.xlane.xlu1 %606  ;;  %v722_v17 = vadd.f32 %v721_v6, %v706_v10 }
 0x2a1   : > { %v626_v9 = vmax.f32 %v607_v7, 1e-12  ;;  %v708_v23 = vsel %vm692_vm8, %v643_v16, 0.0 }
 0x2a3   : > { %v642_v12 = vmin.f32 %v626_v9, 1e+12 }
 0x2a5   : > { %v707_v18 = vsel %vm691_vm7, %v642_v12, 0.0  ;;  %v611_v19 = vpop.xlane.xlu1 %610 }
 0x2a6   : > { %v723_v20 = vadd.f32 %v722_v17, %v707_v18  ;;  %v628_v21 = vmax.f32 %v611_v19, 1e-12 }
 0x2a8   : > { %v644_v24 = vmin.f32 %v628_v21, 1e+12  ;;  %v724_v25 = vadd.f32 %v723_v20, %v708_v23 }
 0x2a9   : > { %v613_v26 = vpop.xlane.xlu1 %612 }
 0x2aa   : > { %v709_v27 = vsel %vm693_vm9, %v644_v24, 0.0  ;;  %v629_v28 = vmax.f32 %v613_v26, 1e-12 }
 0x2ab   : > { %v725_v29 = vadd.f32 %v724_v25, %v709_v27 }
 0x2ac   : > { %v645_v11 = vmin.f32 %v629_v28, 1e+12 }
 0x2ae   : > { %v710_v30 = vsel %vm694_vm11, %v645_v11, 0.0 }
 0x2af   : > { %v726_v31 = vadd.f32 %v725_v29, %v710_v30 }
 0x2b1   : > { %v727_v32 = vrot.slane %v726_v31, 4 }
 0x2b3   : > { %v728_v33 = vadd.f32 %v727_v32, %v726_v31 }
 0x2b5   : > { %v729_v34 = vrot.slane %v728_v33, 2 }
 0x2b7   : > { %v730_v35 = vadd.f32 %v729_v34, %v728_v33 }
 0x2b9   : > { %v731_v36 = vrot.slane %v730_v35, 1 }
 0x2bb   : > { %v732_v53 = vadd.f32 %v731_v36, %v730_v35 }
 0x2bd   : > { %v733_v38 = vadd.f32 %v732_v53, %v711_v37 }
 0x2bf   : > { %735 = vst.msk [vmem:[%s1408_s8] sm:$0x1] %vm263_vm10, %v733_v38 }
 0x2c0 PF: > { %s19_s17 = sadd.s32 1, %s1143_s17   ;;  %s1487_s12 = smov %s1127_s13 }
 0x2c1   : > { %p16_p9 = scmp.ge.s32.totalorder %s19_s17, 4   ;;  %s1488_s13 = smov %s1131_s14 }
 0x2c2   : > { %s1489_s14 = smov %s1262_s27  ;;  %s1490_s15 = smov %s1139_s16 }
 0x2c3   : > { %s1491_s16 = smov %s1493_s25  ;;  %18 = sbr.rel (!%p16_p9) target bundleno = 6 (0x6), region = 93 }
 0x2ca   :  { %753 = vsyncpa [#allocation3], 1 }
 0x2cb   :  { %755 = vsyncpa [#allocation3 + $0x1], 1 }
 0x2cc   :  { %756 = vsyncpa [#allocation5], 1 }
 0x2cd   :  { %758 = vsyncpa [#allocation5 + $0x1], 1 }

</bundles_post_ra>
